<compile_context>
chip_gen: v5e
topology: v5e:2x2
jax: 0.10.0
libtpu: 0.0.40
codegen_flags: <defaults>
</compile_context>

<pallas_src>
import jax
import jax.numpy as jnp
import numpy as np
from jax.experimental import pallas as pl
from jax.experimental.pallas import tpu as pltpu

FLOAT_MIN = float(np.finfo(np.float32).min)  # RLlib's FLOAT_MIN for the mask clamp

LANE = 128        # TPU lane width (last dim)
BATCH_ALIGN = 16  # batch-tile granularity: satisfies f32 (8) and bf16 (16) sublane tiling


def _round_up(x, m):
    return (x + m - 1) // m * m


def _action_mask_fc_kernel(obs_ref, mask_ref,
                           w1_ref, b1_ref,
                           w2_ref, b2_ref,
                           w3_ref, b3_ref,
                           out_ref):
    """Fused 3-layer MLP (tanh, tanh, linear) + action-mask addition on one batch tile."""
    mxu_dtype = w1_ref.dtype  # bf16 (default) or f32 -- set once at prepare_params() time.

    # Hidden layer 1 (tanh).  Matmul operands in mxu_dtype, accumulate + elementwise in f32.
    obs = obs_ref[...].astype(mxu_dtype)
    h1 = jnp.tanh(
        jnp.dot(obs, w1_ref[...], preferred_element_type=jnp.float32) + b1_ref[...]
    )
    # Hidden layer 2 (tanh).
    h2 = jnp.tanh(
        jnp.dot(h1.astype(mxu_dtype), w2_ref[...], preferred_element_type=jnp.float32)
        + b2_ref[...]
    )
    # Logits head (linear).
    logits = (
        jnp.dot(h2.astype(mxu_dtype), w3_ref[...], preferred_element_type=jnp.float32)
        + b3_ref[...]
    )

    # inf_mask = clamp(log(mask), min=FLOAT_MIN).  Action masks are strictly {0,1}, so a
    # compare+select is exactly equivalent and avoids the EUP log().  Padded columns carry
    # mask==0 and therefore land at FLOAT_MIN (sliced away / ignored downstream).
    mask = mask_ref[...].astype(jnp.float32)
    inf_mask = jnp.where(mask > 0.0, jnp.float32(0.0), jnp.float32(FLOAT_MIN))

    out_ref[...] = logits + inf_mask


def init_params(key, obs_dim, hidden, num_outputs):
    """Deterministic synthetic parameter init (mimics TorchFC weight shapes, unpadded f32)."""
    k1, k2, k3 = jax.random.split(key, 3)
    scale = 0.1
    return {
        "w1": scale * jax.random.normal(k1, (obs_dim, hidden), jnp.float32),
        "b1": jnp.zeros((hidden,), jnp.float32),
        "w2": scale * jax.random.normal(k2, (hidden, hidden), jnp.float32),
        "b2": jnp.zeros((hidden,), jnp.float32),
        "w3": scale * jax.random.normal(k3, (hidden, num_outputs), jnp.float32),
        "b3": jnp.zeros((num_outputs,), jnp.float32),
    }


def prepare_params(params, *, use_bf16=True):
    """One-time weight prep: pad hidden/output dims to 128 lanes, cast matmul weights.

    Runs once at init / parameter-update time (hoisted out of the per-call forward path).
    Biases stay f32 (added post-matmul in f32).
    """
    obs_dim, hidden = params["w1"].shape
    num_outputs = params["w3"].shape[1]
    H = _round_up(hidden, LANE)
    N = _round_up(num_outputs, LANE)
    wdt = jnp.bfloat16 if use_bf16 else jnp.float32
    f32 = jnp.float32

    w1 = jnp.zeros((obs_dim, H), wdt).at[:, :hidden].set(params["w1"].astype(wdt))
    b1 = jnp.zeros((1, H), f32).at[:, :hidden].set(params["b1"].astype(f32).reshape(1, -1))
    w2 = jnp.zeros((H, H), wdt).at[:hidden, :hidden].set(params["w2"].astype(wdt))
    b2 = jnp.zeros((1, H), f32).at[:, :hidden].set(params["b2"].astype(f32).reshape(1, -1))
    w3 = jnp.zeros((H, N), wdt).at[:hidden, :num_outputs].set(params["w3"].astype(wdt))
    b3 = jnp.zeros((1, N), f32).at[:, :num_outputs].set(params["b3"].astype(f32).reshape(1, -1))

    return {
        "w1": w1, "b1": b1, "w2": w2, "b2": b2, "w3": w3, "b3": b3,
        "obs_dim": obs_dim, "hidden": hidden, "num_outputs": num_outputs,
        "H": H, "N": N, "mxu_dtype": wdt,
    }


def action_mask_model_forward(obs, action_mask, prepared, *, batch_tile=512):
    """Tile over the batch and run the fused Pallas kernel.

    obs is streamed with its natural (unpadded) feature dim; only the output / mask feature
    dim is padded to a multiple of 128 for lane-dense stores.  Weights arrive pre-padded
    from prepare_params().
    """
    B, obs_dim = obs.shape
    num_outputs = action_mask.shape[1]
    assert obs_dim == prepared["obs_dim"] and num_outputs == prepared["num_outputs"]
    H, N = prepared["H"], prepared["N"]
    f32 = jnp.float32

    # Batch tile: multiple of 16 (f32 & bf16 sublane safe), capped at batch_tile, and split
    # into >=2 grid steps whenever the batch allows it so v7x megacore sharding engages.
    TB = _round_up(min(batch_tile, _round_up(B, BATCH_ALIGN)), BATCH_ALIGN)
    if B > BATCH_ALIGN and _round_up(B, TB) // TB < 2:
        TB = _round_up((B + 1) // 2, BATCH_ALIGN)
    B_pad = _round_up(B, TB)
    grid = (B_pad // TB,)

    # Per-call activation prep only (weights are prepped once, elsewhere).
    if B_pad == B:
        obs_p = obs.astype(f32)
    else:
        obs_p = jnp.zeros((B_pad, obs_dim), f32).at[:B].set(obs.astype(f32))
    # Mask: bf16 ({0,1} exact), feature dim padded to N so the fused output store is lane-dense.
    mask_p = (jnp.zeros((B_pad, N), jnp.bfloat16)
              .at[:B, :num_outputs].set(action_mask.astype(jnp.bfloat16)))

    # Batch-tiled specs for activations; replicated (constant index) specs for weights.
    bspec = lambda shape: pl.BlockSpec(shape, lambda i: (i, 0))
    wspec = lambda shape: pl.BlockSpec(shape, lambda i: (0, 0))

    w_bytes = jnp.dtype(prepared["mxu_dtype"]).itemsize
    flops = 2 * B_pad * (obs_dim * H + H * H + H * N)
    transcendentals = 2 * B_pad * H  # two tanh layers
    bytes_accessed = (4 * B_pad * obs_dim            # obs (f32)
                      + 2 * B_pad * N                # mask (bf16)
                      + 4 * B_pad * N                # output (f32)
                      + w_bytes * (obs_dim * H + H * H + H * N)   # weights
                      + 4 * (2 * H + N))             # biases (f32)

    out_padded = pl.pallas_call(
        _action_mask_fc_kernel,
        out_shape=jax.ShapeDtypeStruct((B_pad, N), jnp.float32),
        grid=grid,
        in_specs=[
            bspec((TB, obs_dim)),          # observations (unpadded feature dim)
            bspec((TB, N)),                # action mask (bf16, padded to lane width)
            wspec((obs_dim, H)), wspec((1, H)),
            wspec((H, H)), wspec((1, H)),
            wspec((H, N)), wspec((1, N)),
        ],
        out_specs=bspec((TB, N)),
        compiler_params=pltpu.CompilerParams(
            dimension_semantics=("parallel",),   # batch axis -> both TCs on v7x
        ),
        cost_estimate=pl.CostEstimate(
            flops=int(flops),
            transcendentals=int(transcendentals),
            bytes_accessed=int(bytes_accessed),
        ),
    )(obs_p, mask_p,
      prepared["w1"], prepared["b1"],
      prepared["w2"], prepared["b2"],
      prepared["w3"], prepared["b3"])

    # NOTE: when the consumer tolerates padded logits (extra columns sit at ~FLOAT_MIN, extra
    # rows are invalid), returning out_padded directly avoids this extra read+write.
    return out_padded[:B, :num_outputs]


def reference_forward(obs, action_mask, params):
    """Pure-JAX f32 reference with the original log/clamp semantics."""
    h1 = jnp.tanh(obs @ params["w1"] + params["b1"])
    h2 = jnp.tanh(h1 @ params["w2"] + params["b2"])
    logits = h2 @ params["w3"] + params["b3"]
    inf_mask = jnp.maximum(jnp.log(action_mask), FLOAT_MIN)
    return logits + inf_mask


if __name__ == "__main__":
    OBS_DIM = 32     # flattened observation size
    HIDDEN = 32      # fcnet hidden width (small synthetic stand-in for 256)
    NUM_OUTPUTS = 8  # action-space size == num_outputs

    key = jax.random.PRNGKey(0)
    k_obs, k_mask, k_par = jax.random.split(key, 3)
    params = init_params(k_par, OBS_DIM, HIDDEN, NUM_OUTPUTS)

    prepared_f32 = prepare_params(params, use_bf16=False)   # exact-match path
    prepared_bf16 = prepare_params(params, use_bf16=True)   # production (bf16 MXU) path

    # --- case 1: single-tile batch, f32 MXU path (tight tolerance) ---
    B = 8
    obs = jax.random.normal(k_obs, (B, OBS_DIM), jnp.float32)
    action_mask = (jax.random.uniform(k_mask, (B, NUM_OUTPUTS)) > 0.5).astype(jnp.float32)
    action_mask = action_mask.at[:, 0].set(1.0)  # at least one valid action per row

    out = jax.block_until_ready(action_mask_model_forward(obs, action_mask, prepared_f32))
    ref = reference_forward(obs, action_mask, params)
    np.testing.assert_allclose(np.asarray(out), np.asarray(ref), rtol=1e-5, atol=1e-5)

    # --- case 2: ragged batch -> 2 grid steps (megacore path) + default bf16 MXU path ---
    B2 = 20
    obs2 = jax.random.normal(jax.random.PRNGKey(1), (B2, OBS_DIM), jnp.float32)
    mask2 = (jax.random.uniform(jax.random.PRNGKey(2), (B2, NUM_OUTPUTS)) > 0.5).astype(jnp.float32)
    mask2 = mask2.at[:, 0].set(1.0)

    out2 = jax.block_until_ready(action_mask_model_forward(obs2, mask2, prepared_bf16))
    ref2 = reference_forward(obs2, mask2, params)
    np.testing.assert_allclose(np.asarray(out2), np.asarray(ref2), rtol=2e-2, atol=2e-2)

    print("KERNEL_OK")
</pallas_src>

<mosaic_0001>
module attributes {stable_mosaic.version = 11 : i64} {
  func.func @_action_mask_fc_kernel(%arg0: i32, %arg1: memref<16x32xf32, #tpu.memory_space<vmem>>, %arg2: memref<16x128xbf16, #tpu.memory_space<vmem>>, %arg3: memref<32x128xf32, #tpu.memory_space<vmem>>, %arg4: memref<1x128xf32, #tpu.memory_space<vmem>>, %arg5: memref<128x128xf32, #tpu.memory_space<vmem>>, %arg6: memref<1x128xf32, #tpu.memory_space<vmem>>, %arg7: memref<128x128xf32, #tpu.memory_space<vmem>>, %arg8: memref<1x128xf32, #tpu.memory_space<vmem>>, %arg9: memref<16x128xf32, #tpu.memory_space<vmem>>) attributes {dimension_semantics = [#tpu.dimension_semantics<parallel>], iteration_bounds = array<i64: 1>, scalar_prefetch = 0 : i64, scratch_operands = 0 : i64, tpu.core_type = #tpu.core_type<tc>, window_params = [{transform_indices = @transform_0, window_bounds = array<i64: 16, 32>}, {transform_indices = @transform_1, window_bounds = array<i64: 16, 128>}, {pipeline_mode = #tpu.pipeline_mode<synchronous>, transform_indices = @transform_2, window_bounds = array<i64: 32, 128>}, {pipeline_mode = #tpu.pipeline_mode<synchronous>, transform_indices = @transform_3, window_bounds = array<i64: 1, 128>}, {pipeline_mode = #tpu.pipeline_mode<synchronous>, transform_indices = @transform_4, window_bounds = array<i64: 128, 128>}, {pipeline_mode = #tpu.pipeline_mode<synchronous>, transform_indices = @transform_5, window_bounds = array<i64: 1, 128>}, {pipeline_mode = #tpu.pipeline_mode<synchronous>, transform_indices = @transform_6, window_bounds = array<i64: 128, 128>}, {pipeline_mode = #tpu.pipeline_mode<synchronous>, transform_indices = @transform_7, window_bounds = array<i64: 1, 128>}, {transform_indices = @transform_8, window_bounds = array<i64: 16, 128>}]} {
    %c0 = arith.constant 0 : index
    %c0_0 = arith.constant 0 : index
    %0 = vector.load %arg1[%c0, %c0_0] : memref<16x32xf32, #tpu.memory_space<vmem>>, vector<16x32xf32>
    %c0_1 = arith.constant 0 : index
    %c0_2 = arith.constant 0 : index
    %1 = vector.load %arg3[%c0_1, %c0_2] : memref<32x128xf32, #tpu.memory_space<vmem>>, vector<32x128xf32>
    %cst = arith.constant dense<0.000000e+00> : vector<16x128xf32>
    %2 = tpu.matmul %0, %1, %cst {dimension_numbers = #tpu.dot_dimension_numbers<[1], [0], [0], [1], [0, 0, 1, 1], [], []>} : vector<16x32xf32>, vector<32x128xf32>, vector<16x128xf32> -> vector<16x128xf32>
    %c0_3 = arith.constant 0 : index
    %c0_4 = arith.constant 0 : index
    %3 = vector.load %arg4[%c0_3, %c0_4] : memref<1x128xf32, #tpu.memory_space<vmem>>, vector<1x128xf32>
    %4 = vector.broadcast %3 : vector<1x128xf32> to vector<16x128xf32>
    %5 = arith.addf %2, %4 : vector<16x128xf32>
    %6 = math.tanh %5 : vector<16x128xf32>
    %c0_5 = arith.constant 0 : index
    %c0_6 = arith.constant 0 : index
    %7 = vector.load %arg5[%c0_5, %c0_6] : memref<128x128xf32, #tpu.memory_space<vmem>>, vector<128x128xf32>
    %cst_7 = arith.constant dense<0.000000e+00> : vector<16x128xf32>
    %8 = tpu.matmul %6, %7, %cst_7 {dimension_numbers = #tpu.dot_dimension_numbers<[1], [0], [0], [1], [0, 0, 1, 1], [], []>} : vector<16x128xf32>, vector<128x128xf32>, vector<16x128xf32> -> vector<16x128xf32>
    %c0_8 = arith.constant 0 : index
    %c0_9 = arith.constant 0 : index
    %9 = vector.load %arg6[%c0_8, %c0_9] : memref<1x128xf32, #tpu.memory_space<vmem>>, vector<1x128xf32>
    %10 = vector.broadcast %9 : vector<1x128xf32> to vector<16x128xf32>
    %11 = arith.addf %8, %10 : vector<16x128xf32>
    %12 = math.tanh %11 : vector<16x128xf32>
    %c0_10 = arith.constant 0 : index
    %c0_11 = arith.constant 0 : index
    %13 = vector.load %arg7[%c0_10, %c0_11] : memref<128x128xf32, #tpu.memory_space<vmem>>, vector<128x128xf32>
    %cst_12 = arith.constant dense<0.000000e+00> : vector<16x128xf32>
    %14 = tpu.matmul %12, %13, %cst_12 {dimension_numbers = #tpu.dot_dimension_numbers<[1], [0], [0], [1], [0, 0, 1, 1], [], []>} : vector<16x128xf32>, vector<128x128xf32>, vector<16x128xf32> -> vector<16x128xf32>
    %c0_13 = arith.constant 0 : index
    %c0_14 = arith.constant 0 : index
    %15 = vector.load %arg8[%c0_13, %c0_14] : memref<1x128xf32, #tpu.memory_space<vmem>>, vector<1x128xf32>
    %16 = vector.broadcast %15 : vector<1x128xf32> to vector<16x128xf32>
    %17 = arith.addf %14, %16 : vector<16x128xf32>
    %c0_15 = arith.constant 0 : index
    %c0_16 = arith.constant 0 : index
    %18 = vector.load %arg2[%c0_15, %c0_16] : memref<16x128xbf16, #tpu.memory_space<vmem>>, vector<16x128xbf16>
    %19 = arith.extf %18 : vector<16x128xbf16> to vector<16x128xf32>
    %cst_17 = arith.constant 0.000000e+00 : f32
    %20 = vector.broadcast %cst_17 : f32 to vector<16x128xf32>
    %21 = arith.cmpf ogt, %19, %20 : vector<16x128xf32>
    %cst_18 = arith.constant 0.000000e+00 : f32
    %cst_19 = arith.constant -3.40282347E+38 : f32
    %22 = vector.broadcast %cst_18 : f32 to vector<16x128xf32>
    %23 = vector.broadcast %cst_19 : f32 to vector<16x128xf32>
    %24 = arith.select %21, %22, %23 : vector<16x128xi1>, vector<16x128xf32>
    %25 = arith.addf %17, %24 : vector<16x128xf32>
    %c0_20 = arith.constant 0 : index
    %c0_21 = arith.constant 0 : index
    %26 = vector.load %arg9[%c0_20, %c0_21] : memref<16x128xf32, #tpu.memory_space<vmem>>, vector<16x128xf32>
    tpu.vector_store %arg9[%c0_20, %c0_21], %25 {strides = array<i32>} : memref<16x128xf32, #tpu.memory_space<vmem>>, vector<16x128xf32>,
    return
  }
  func.func @transform_0(%arg0: i32) -> (i32, i32) {
    %c0_i32 = arith.constant 0 : i32
    %c0_i32_0 = arith.constant 0 : i32
    return %arg0, %c0_i32 : i32, i32
  }
  func.func @transform_1(%arg0: i32) -> (i32, i32) {
    %c0_i32 = arith.constant 0 : i32
    %c0_i32_0 = arith.constant 0 : i32
    return %arg0, %c0_i32 : i32, i32
  }
  func.func @transform_2(%arg0: i32) -> (i32, i32) {
    %c0_i32 = arith.constant 0 : i32
    %c0_i32_0 = arith.constant 0 : i32
    %c0_i32_1 = arith.constant 0 : i32
    return %c0_i32, %c0_i32_0 : i32, i32
  }
  func.func @transform_3(%arg0: i32) -> (i32, i32) {
    %c0_i32 = arith.constant 0 : i32
    %c0_i32_0 = arith.constant 0 : i32
    %c0_i32_1 = arith.constant 0 : i32
    return %c0_i32, %c0_i32_0 : i32, i32
  }
  func.func @transform_4(%arg0: i32) -> (i32, i32) {
    %c0_i32 = arith.constant 0 : i32
    %c0_i32_0 = arith.constant 0 : i32
    %c0_i32_1 = arith.constant 0 : i32
    return %c0_i32, %c0_i32_0 : i32, i32
  }
  func.func @transform_5(%arg0: i32) -> (i32, i32) {
    %c0_i32 = arith.constant 0 : i32
    %c0_i32_0 = arith.constant 0 : i32
    %c0_i32_1 = arith.constant 0 : i32
    return %c0_i32, %c0_i32_0 : i32, i32
  }
  func.func @transform_6(%arg0: i32) -> (i32, i32) {
    %c0_i32 = arith.constant 0 : i32
    %c0_i32_0 = arith.constant 0 : i32
    %c0_i32_1 = arith.constant 0 : i32
    return %c0_i32, %c0_i32_0 : i32, i32
  }
  func.func @transform_7(%arg0: i32) -> (i32, i32) {
    %c0_i32 = arith.constant 0 : i32
    %c0_i32_0 = arith.constant 0 : i32
    %c0_i32_1 = arith.constant 0 : i32
    return %c0_i32, %c0_i32_0 : i32, i32
  }
  func.func @transform_8(%arg0: i32) -> (i32, i32) {
    %c0_i32 = arith.constant 0 : i32
    %c0_i32_0 = arith.constant 0 : i32
    return %arg0, %c0_i32 : i32, i32
  }
}

</mosaic_0001>

<bundles_post_ra>
// kernel: tpu_custom_call.1
= control target key start
LH: loop header
LB: loop body
LE: loop exit
PB: predicated region body
PF: predicated region fallthrough
CT: control target
= control target key end

     0   :  { %13 = vsyncpa [#allocation3], 0  ;;  %s567_s0 = inlined_call_operand.hbm [shape: f32[16,32], index: 0, kind: input, shape index: {}]   ;;  %s568_s1 = inlined_call_operand.hbm [shape: bf16[16,128], index: 1, kind: input, shape index: {}]   ;;  %s569_s2 = inlined_call_operand.hbm [shape: f32[32,128], index: 2, kind: input, shape index: {}]   ;;  %s570_s3 = inlined_call_operand.vmem [shape: f32[1,128], index: 3, kind: input, shape index: {}]   ;;  %s571_s4 = inlined_call_operand.hbm [shape: f32[128,128], index: 4, kind: input, shape index: {}]   ;;  %s572_s5 = inlined_call_operand.vmem [shape: f32[1,128], index: 5, kind: input, shape index: {}]   ;;  %s573_s6 = inlined_call_operand.hbm [shape: f32[128,128], index: 6, kind: input, shape index: {}]   ;;  %s574_s7 = inlined_call_operand.vmem [shape: f32[1,128], index: 7, kind: input, shape index: {}]   ;;  %s575_s8 = inlined_call_operand.hbm [shape: f32[16,128], index: 8, kind: output, shape index: {}]  }
   0x1   :  { %14 = vsyncpa [#allocation6], 0 }
   0x2   :  { %15 = vsyncpa [#allocation9], 0  ;;  %s34_s29 = sshll.u32 %s568_s1, 4  ;;  %s35_s29 = int_to_ptr.hbm [resolvable:$true] %s34_s29 }
   0x3   :  { %16 = vsyncpa [#allocation4], 0  ;;  %s467_s30 = smov [#allocation5]   ;;  %s468_s10 = smov 64  }
   0x4   :  { %s36_s9 = sshll.u32 %s467_s30, 4  ;;  %s469_s11 = smov 4   ;;  %s37_s9 = int_to_ptr.vmem [resolvable:$true] %s36_s9 }
   0x5   :  { %42 = dma.hbm_to_vmem [thread:$0]  %s35_s29, 128, %s37_s9, [#allocation6], %s468_s10, %s468_s10, %s469_s11  }
   0x6   :  { %s62_s14 = sshll.u32 %s571_s4, 4  ;;  %s470_s15 = smov [#allocation8]   ;;  %s63_s14 = int_to_ptr.hbm [resolvable:$true] %s62_s14 }
   0x7   :  { %s64_s16 = sshll.u32 %s470_s15, 4  ;;  %s21_s19 = sshll.u32 %s567_s0, 4  ;;  %s65_s16 = int_to_ptr.vmem [resolvable:$true] %s64_s16  ;;  %s22_s19 = int_to_ptr.hbm [resolvable:$true] %s21_s19 }
   0x8   :  { %s471_s1 = smov 128   ;;  %s472_s20 = smov 8  }
   0x9   :  { %70 = dma.hbm_to_vmem [thread:$0]  %s63_s14, 2048, %s65_s16, [#allocation9], %s471_s1, %s471_s1, %s472_s20  }
   0xa   :  { %s47_s23 = sshll.u32 %s569_s2, 4  ;;  %s473_s4 = smov [#allocation2]   ;;  %s48_s23 = int_to_ptr.hbm [resolvable:$true] %s47_s23 }
   0xb   :  { %s23_s24 = sshll.u32 %s473_s4, 4  ;;  %s474_s0 = smov [#allocation7]   ;;  %s24_s24 = int_to_ptr.vmem [resolvable:$true] %s23_s24 }
   0xc   :  { %29 = dma.hbm_to_vmem [thread:$0]  %s22_s19, 256, %s24_s24, [#allocation3], %s471_s1, %s471_s1, %s472_s20  }
   0xd   :  { %s49_s25 = sshll.u32 %s474_s0, 4  ;;  %s77_s28 = sshll.u32 %s573_s6, 4  ;;  %s50_s25 = int_to_ptr.vmem [resolvable:$true] %s49_s25  ;;  %s78_s28 = int_to_ptr.hbm [resolvable:$true] %s77_s28 }
   0xe   :  { %55 = dma.hbm_to_vmem [thread:$0]  %s48_s23, 512, %s50_s25, [#allocation6], %s471_s1, %s471_s1, %s472_s20  }
   0xf   :  { %s475_s2 = smov [#allocation10]  }
  0x10   :  { %s79_s29 = sshll.u32 %s475_s2, 4  ;;  %s80_s29 = int_to_ptr.vmem [resolvable:$true] %s79_s29 }
  0x11   :  { %85 = dma.hbm_to_vmem [thread:$0]  %s78_s28, 2048, %s80_s29, [#allocation9], %s471_s1, %s471_s1, %s472_s20  }
  0x12   :  { %459 = dma.done.wait [#allocation3], 256  }
  0x13   :  { %460 = vsyncadd [#allocation3], 4294967040 }
  0x14   :  { %461 = dma.done.wait [#allocation6], 640  }
  0x15   :  { %462 = vsyncadd [#allocation6], 4294966656 }
  0x16   :  { %463 = dma.done.wait [#allocation9], 4096  }
  0x17   :  { %464 = vsyncadd [#allocation9], 4294963200  ;;  %v113_v0 = vld [vmem:[#allocation7 + $0x18] sm:$0xff]  ;;  %v112_v1 = vld [vmem:[#allocation7 + $0x10] sm:$0xff]  ;;  %vm118_vm0 = vcmask 261120   ;;  %s256_s15 = sshll.u32 %s575_s8, 4  ;;  %s257_s15 = int_to_ptr.hbm [resolvable:$true] %s256_s15 }
  0x18   :  { %137 = vmatpush.msra.mxu0 %v113_v0  ;;  %v111_v2 = vld [vmem:[#allocation7 + $0x8] sm:$0xff]  ;;  %v165_v3 = vld [vmem:[#allocation8 + $0x78] sm:$0xff]  ;;  %v164_v4 = vld [vmem:[#allocation8 + $0x70] sm:$0xff]  ;;  %v476_v56 = vmov -3.4028235e+38  }
  0x19   :  { %170 = vmatpush.msra.mxu1 %v165_v3  ;;  %v110_v5 = vld [vmem:[#allocation7] sm:$0xff]  ;;  %v163_v6 = vld [vmem:[#allocation8 + $0x68] sm:$0xff]  ;;  %277 = vmatpush.msra.mxu3 %v165_v3  ;;  %v161_v9 = vld [vmem:[#allocation8 + $0x58] sm:$0xff] }
  0x1a   :  { %138 = vmatpush.msra.mxu0 %v112_v1  ;;  %v108_v7 = vld [vmem:[#allocation2] sm:$0xff]  ;;  %v162_v8 = vld [vmem:[#allocation8 + $0x60] sm:$0xff]  ;;  %v160_v10 = vld [vmem:[#allocation8 + $0x50] sm:$0xff] }
  0x1b   :  { %171 = vmatpush.msra.mxu1 %v164_v4  ;;  %278 = vmatpush.msra.mxu3 %v164_v4  ;;  %v159_v11 = vld [vmem:[#allocation8 + $0x48] sm:$0xff]  ;;  %v109_v12 = vld [vmem:[#allocation2 + $0x8] sm:$0xff]  ;;  %v158_v13 = vld [vmem:[#allocation8 + $0x40] sm:$0xff] }
  0x1c   :  { %139 = vmatpush.msra.mxu0 %v111_v2  ;;  %v157_v14 = vld [vmem:[#allocation8 + $0x38] sm:$0xff]  ;;  %v156_v15 = vld [vmem:[#allocation8 + $0x30] sm:$0xff]  ;;  %v155_v16 = vld [vmem:[#allocation8 + $0x28] sm:$0xff] }
  0x1d   :  { %172 = vmatpush.msra.mxu1 %v163_v6  ;;  %279 = vmatpush.msra.mxu3 %v163_v6  ;;  %v154_v17 = vld [vmem:[#allocation8 + $0x20] sm:$0xff]  ;;  %v153_v18 = vld [vmem:[#allocation8 + $0x18] sm:$0xff]  ;;  %v152_v19 = vld [vmem:[#allocation8 + $0x10] sm:$0xff] }
  0x1e   :  { %140 = vmatpush.msra.mxu0 %v110_v5  ;;  %v151_v20 = vld [vmem:[#allocation8 + $0x8] sm:$0xff]  ;;  %v150_v21 = vld [vmem:[#allocation8] sm:$0xff]  ;;  %v210_v22 = vld [vmem:[#allocation10 + $0x78] sm:$0xff] }
  0x1f   :  { %271 = vmatmul.msk.f32.vlgmr.msra.gmra.mxu0 %vm118_vm0, %v108_v7  ;;  %173 = vmatpush.msra.mxu1 %v162_v8  ;;  %v209_v23 = vld [vmem:[#allocation10 + $0x70] sm:$0xff]  ;;  %v208_v24 = vld [vmem:[#allocation10 + $0x68] sm:$0xff]  ;;  %v207_v25 = vld [vmem:[#allocation10 + $0x60] sm:$0xff] }
  0x20   :  { %280 = vmatpush.msra.mxu3 %v162_v8  ;;  %215 = vmatpush.msra.mxu2 %v210_v22  ;;  %v206_v26 = vld [vmem:[#allocation10 + $0x58] sm:$0xff]  ;;  %v205_v27 = vld [vmem:[#allocation10 + $0x50] sm:$0xff]  ;;  %v204_v28 = vld [vmem:[#allocation10 + $0x48] sm:$0xff] }
  0x21   :  { %174 = vmatpush.msra.mxu1 %v161_v9  ;;  %v304_v29 = vld [vmem:[%s570_s3] ss:$0 sm:$0xff]  ;;  %v203_v30 = vld [vmem:[#allocation10 + $0x40] sm:$0xff]  ;;  %v202_v32 = vld [vmem:[#allocation10 + $0x38] sm:$0xff] }
  0x22   :  { %281 = vmatpush.msra.mxu3 %v161_v9  ;;  %216 = vmatpush.msra.mxu2 %v209_v23  ;;  %v201_v34 = vld [vmem:[#allocation10 + $0x30] sm:$0xff]  ;;  %v200_v35 = vld [vmem:[#allocation10 + $0x28] sm:$0xff]  ;;  %v199_v40 = vld [vmem:[#allocation10 + $0x20] sm:$0xff] }
  0x23   :  { %175 = vmatpush.msra.mxu1 %v160_v10  ;;  %v198_v41 = vld [vmem:[#allocation10 + $0x18] sm:$0xff]  ;;  %v197_v42 = vld [vmem:[#allocation10 + $0x10] sm:$0xff]  ;;  %v196_v43 = vld [vmem:[#allocation10 + $0x8] sm:$0xff] }
  0x24   :  { %282 = vmatpush.msra.mxu3 %v160_v10  ;;  %217 = vmatpush.msra.mxu2 %v208_v24  ;;  %v195_v44 = vld [vmem:[#allocation10] sm:$0xff]  ;;  %v305_v45 = vld [vmem:[%s572_s5] ss:$0 sm:$0xff]  ;;  %v274_v52 = vld [vmem:[#allocation5] sm:$0xff]   ;;  %s477_s5 = smov [#allocation11]  }
  0x25   :  { %176 = vmatpush.msra.mxu1 %v159_v11  ;;  %v275_v53 = vunpack.c.l.bf16 %v274_v52  ;;  %v306_v54 = vld [vmem:[%s574_s7] ss:$0 sm:$0xff]  ;;  %v276_v60 = vunpack.c.h.bf16 %v274_v52  ;;  %s254_s12 = sshll.u32 %s477_s5, 4  ;;  %s255_s12 = int_to_ptr.vmem [resolvable:$true] %s254_s12 }
  0x26   :  { %283 = vmatpush.msra.mxu3 %v159_v11  ;;  %218 = vmatpush.msra.mxu2 %v207_v25 }
  0x27   :  { %272 = vmatmul.msk.f32.gmra.mxu0 %vm118_vm0, %v109_v12  ;;  %177 = vmatpush.msra.mxu1 %v158_v13  ;;  %vm242_vm1 = vcmp.gt.f32.partialorder %v275_v53, 0.0  ;;  %vm243_vm2 = vcmp.gt.f32.partialorder %v276_v60, 0.0 }
  0x28   :  { %284 = vmatpush.msra.mxu3 %v158_v13  ;;  %219 = vmatpush.msra.mxu2 %v206_v26  ;;  %v244_v57 = vsel %vm242_vm1, 0.0, %v476_v56  ;;  %v245_v62 = vsel %vm243_vm2, 0.0, %v476_v56 }
  0x29   :  { %178 = vmatpush.msra.mxu1 %v157_v14 }
  0x2a   :  { %285 = vmatpush.msra.mxu3 %v157_v14  ;;  %220 = vmatpush.msra.mxu2 %v205_v27 }
  0x2b   :  { %179 = vmatpush.msra.mxu1 %v156_v15 }
  0x2c   :  { %286 = vmatpush.msra.mxu3 %v156_v15  ;;  %221 = vmatpush.msra.mxu2 %v204_v28 }
  0x2d   :  { %180 = vmatpush.msra.mxu1 %v155_v16 }
  0x2e   :  { %287 = vmatpush.msra.mxu3 %v155_v16  ;;  %222 = vmatpush.msra.mxu2 %v203_v30 }
  0x2f   :  { %181 = vmatpush.msra.mxu1 %v154_v17 }
  0x30   :  { %288 = vmatpush.msra.mxu3 %v154_v17  ;;  %223 = vmatpush.msra.mxu2 %v202_v32 }
  0x31   :  { %182 = vmatpush.msra.mxu1 %v153_v18 }
  0x32   :  { %289 = vmatpush.msra.mxu3 %v153_v18  ;;  %224 = vmatpush.msra.mxu2 %v201_v34 }
  0x33   :  { %183 = vmatpush.msra.mxu1 %v152_v19 }
  0x34   :  { %290 = vmatpush.msra.mxu3 %v152_v19  ;;  %225 = vmatpush.msra.mxu2 %v200_v35 }
  0x35   :  { %184 = vmatpush.msra.mxu1 %v151_v20 }
  0x36   :  { %291 = vmatpush.msra.mxu3 %v151_v20  ;;  %226 = vmatpush.msra.mxu2 %v199_v40 }
  0x37   :  { %185 = vmatpush.msra.mxu1 %v150_v21 }
  0x38   :  { %292 = vmatpush.msra.mxu3 %v150_v21  ;;  %227 = vmatpush.msra.mxu2 %v198_v41 }
  0x3a   :  { %228 = vmatpush.msra.mxu2 %v197_v42 }
  0x3c   :  { %229 = vmatpush.msra.mxu2 %v196_v43 }
  0x3e   :  { %230 = vmatpush.msra.mxu2 %v195_v44 }
  0x9c   :  { %v142_v31 = vpop.f32.mrf.mxu0 }
  0x9d   :  { %v143_v33 = vadd.f32 %v304_v29, %v142_v31 }
  0x9f   :  { %307 = vtanh.f32 %v143_v33 }
  0xa4   :  { %v145_v36 = vpop.f32.mrf.mxu0 }
  0xa5   :  { %v308_v37 = vpop.eup %307  ;;  %v146_v38 = vadd.f32 %v304_v29, %v145_v36 }
  0xa6   :  { %186 = vmatmul.f32.vlgmr.msra.gmra.mxu1 %v308_v37 }
  0xa7   :  { %309 = vtanh.f32 %v146_v38 }
  0xad   :  { %v310_v39 = vpop.eup %309 }
  0xae   :  { %189 = vmatmul.f32.vlgmr.msra.gmra.mxu3 %v310_v39 }
 0x123   :  { %v187_v46 = vpop.f32.mrf.mxu1 }
 0x124   :  { %v188_v47 = vadd.f32 %v305_v45, %v187_v46 }
 0x126   :  { %311 = vtanh.f32 %v188_v47 }
 0x12c   :  { %v312_v48 = vpop.eup %311 }
 0x12d   :  { %231 = vmatmul.f32.vlgmr.msra.gmra.mxu2 %v312_v48 }
 0x131   :  { %v190_v49 = vpop.f32.mrf.mxu3 }
 0x132   :  { %v191_v50 = vadd.f32 %v305_v45, %v190_v49 }
 0x134   :  { %313 = vtanh.f32 %v191_v50 }
 0x13a   :  { %v314_v51 = vpop.eup %313 }
 0x13b   :  { %234 = vmatmul.f32.gmra.mxu2 %v314_v51 }
 0x1b0   :  { %v232_v55 = vpop.f32.mrf.mxu2 }
 0x1b1   :  { %v233_v58 = vadd.f32 %v306_v54, %v232_v55 }
 0x1b3   :  { %v246_v59 = vadd.f32 %v244_v57, %v233_v58 }
 0x1b5   :  { %248 = vst [vmem:[#allocation11] sm:$0xff] %v246_v59 }
 0x1be   :  { %v235_v61 = vpop.f32.mrf.mxu2 }
 0x1bf   :  { %v236_v63 = vadd.f32 %v306_v54, %v235_v61 }
 0x1c1   :  { %v247_v0 = vadd.f32 %v245_v62, %v236_v63 }
 0x1c3   :  { %249 = vst [vmem:[#allocation11 + $0x8] sm:$0xff] %v247_v0 }
 0x1c4   :  { %262 = dma.vmem_to_hbm [thread:$0]  %s255_s12, 256, %s257_s15, [#allocation4], %s471_s1, %s471_s1, %s472_s20  }
 0x1c5   :  { %465 = dma.done.wait [#allocation4], 256  }
 0x1c6   :  { %466 = vsyncadd [#allocation4], 4294967040 }
 0x1c7   :  { %267 = vsyncpa [#allocation3], 1 }
 0x1c8   :  { %268 = vsyncpa [#allocation6], 1 }
 0x1c9   :  { %269 = vsyncpa [#allocation9], 1 }
 0x1ca   :  { %270 = vsyncpa [#allocation4], 1 }

</bundles_post_ra>
